<compile_context>
chip_gen: v5e
topology: v5e:2x2
jax: 0.10.0
libtpu: 0.0.40
codegen_flags: <defaults>
</compile_context>

<pallas_src>
import functools

import jax
import jax.numpy as jnp
from jax import lax
from jax.experimental import pallas as pl
from jax.experimental.pallas import tpu as pltpu


_MASK_VALUE = -1e30  # large negative instead of -inf: exp() underflows to 0, no NaNs


def _proj_kernel(x_ref, w_ref, o_ref):
    # x_ref: (tm, C)   w_ref: (C, hs)   o_ref: (tm, hs)
    o_ref[...] = jnp.dot(
        x_ref[...], w_ref[...], preferred_element_type=jnp.float32
    ).astype(o_ref.dtype)


def _attn_kernel(q_ref, kv_ref, o_ref, m_sc, l_sc, acc_sc, *, scale, tq, tk):
    # q_ref:  (1, tq, hs)
    # kv_ref: (1, tk, hs)  -- the same projected tensor serves as both k and v,
    #                         matching the module (q = k = v = key(x)).
    # o_ref:  (1, tq, hs)
    # scratch: m_sc (tq,1) f32, l_sc (tq,1) f32, acc_sc (tq,hs) f32
    qi = pl.program_id(1)
    ki = pl.program_id(2)

    @pl.when(ki == 0)
    def _init():
        m_sc[...] = jnp.full_like(m_sc, -jnp.inf)
        l_sc[...] = jnp.zeros_like(l_sc)
        acc_sc[...] = jnp.zeros_like(acc_sc)

    q_start = qi * tq
    kv_start = ki * tk

    # Skip kv tiles that lie entirely above the causal diagonal.
    @pl.when(kv_start <= q_start + (tq - 1))
    def _compute():
        q = q_ref[0]            # (tq, hs) f32
        kv = kv_ref[0]          # (tk, hs) f32

        # s = q @ k^T * C**-0.5  (contract head dim; no explicit transpose)
        s = lax.dot_general(
            q, kv, (((1,), (1,)), ((), ())), preferred_element_type=jnp.float32
        ) * scale

        rows = q_start + lax.broadcasted_iota(jnp.int32, (tq, tk), 0)
        cols = kv_start + lax.broadcasted_iota(jnp.int32, (tq, tk), 1)
        s = jnp.where(rows >= cols, s, _MASK_VALUE)   # masked_fill(tril == 0, -inf)

        m_prev = m_sc[...]
        m_new = jnp.maximum(m_prev, s.max(axis=-1, keepdims=True))
        alpha = jnp.exp(m_prev - m_new)
        p = jnp.exp(s - m_new)
        l_sc[...] = alpha * l_sc[...] + p.sum(axis=-1, keepdims=True)
        acc_sc[...] = alpha * acc_sc[...] + jnp.dot(
            p, kv, preferred_element_type=jnp.float32)         # p @ v
        m_sc[...] = m_new

    @pl.when(ki == pl.num_programs(2) - 1)
    def _finalize():
        # softmax normalization; Dropout(eval) == identity.
        o_ref[0] = (acc_sc[...] / l_sc[...]).astype(o_ref.dtype)


def head_forward(x, w_key, *, tm=128, tq=128, tk=128):
    """One attention head, matching the reference module's forward.

    x:     (B, T, C)            float32
    w_key: (C, head_size)       (transpose of the PyTorch Linear.weight)
    The original module applies self.key to produce q, k AND v, so only the
    key weight is used.  Returns (B, T, head_size).
    """
    B, T, C = x.shape
    hs = w_key.shape[1]
    scale = C ** -0.5
    M = B * T

    # ---- 1) projection p = x @ w_key (serves as q, k and v) ----
    tm = min(tm, M)
    assert M % tm == 0 and tm % 8 == 0
    p = pl.pallas_call(
        _proj_kernel,
        out_shape=jax.ShapeDtypeStruct((M, hs), x.dtype),
        grid_spec=pltpu.PrefetchScalarGridSpec(
            num_scalar_prefetch=0,
            grid=(M // tm,),
            in_specs=[
                pl.BlockSpec((tm, C), lambda i: (i, 0)),   # x row tile
                pl.BlockSpec((C, hs), lambda i: (0, 0)),   # W_key (resident)
            ],
            out_specs=pl.BlockSpec((tm, hs), lambda i: (i, 0)),
        ),
        compiler_params=pltpu.CompilerParams(dimension_semantics=("parallel",)),
    )(x.reshape(M, C), w_key).reshape(B, T, hs)

    # ---- 2) causal flash attention with q = k = v = p ----
    tq = min(tq, T)
    tk = min(tk, T)
    assert T % tq == 0 and T % tk == 0 and tq % 8 == 0 and tk % 8 == 0

    kernel = functools.partial(_attn_kernel, scale=scale, tq=tq, tk=tk)
    out = pl.pallas_call(
        kernel,
        out_shape=jax.ShapeDtypeStruct((B, T, hs), x.dtype),
        grid_spec=pltpu.PrefetchScalarGridSpec(
            num_scalar_prefetch=0,
            grid=(B, T // tq, T // tk),
            in_specs=[
                pl.BlockSpec((1, tq, hs), lambda b, qi, ki: (b, qi, 0)),  # q rows
                pl.BlockSpec((1, tk, hs), lambda b, qi, ki: (b, ki, 0)),  # shared k/v rows
            ],
            out_specs=pl.BlockSpec((1, tq, hs), lambda b, qi, ki: (b, qi, 0)),
            scratch_shapes=[
                pltpu.VMEM((tq, 1), jnp.float32),    # running max
                pltpu.VMEM((tq, 1), jnp.float32),    # running denominator
                pltpu.VMEM((tq, hs), jnp.float32),   # f32 output accumulator
            ],
        ),
        compiler_params=pltpu.CompilerParams(
            dimension_semantics=("parallel", "parallel", "arbitrary")),
    )(p, p)
    return out


def head_ref(x, w_key):
    """Plain-JAX reference with the module's exact semantics (eval dropout)."""
    B, T, C = x.shape
    p = x @ w_key                                   # k = q = v = key(x)
    s = jnp.einsum('bqh,bkh->bqk', p, p) * (C ** -0.5)
    tril = jnp.tril(jnp.ones((T, T), dtype=bool))
    s = jnp.where(tril[None], s, -jnp.inf)
    w = jax.nn.softmax(s, axis=-1)
    return jnp.einsum('bqk,bkh->bqh', w, p)


if __name__ == "__main__":
    # Small shapes consistent with the module (scaled down from the 512/512
    # defaults): batch=2, seq=256, dim_embedding=256, head_size=128.
    B, T, C, HS = 2, 256, 256, 128

    key = jax.random.PRNGKey(0)
    kx, kw = jax.random.split(key)

    # PyTorch Linear default init: U(-1/sqrt(fan_in), 1/sqrt(fan_in)), no bias.
    bound = 1.0 / (C ** 0.5)
    w_key = jax.random.uniform(kw, (C, HS), jnp.float32, -bound, bound)
    x = jax.random.normal(kx, (B, T, C), jnp.float32)

    out = jax.block_until_ready(head_forward(x, w_key))
    ref = head_ref(x, w_key)

    assert out.shape == (B, T, HS)
    max_err = float(jnp.max(jnp.abs(out - ref)))
    assert jnp.allclose(out, ref, atol=1e-3, rtol=1e-3), max_err

    print("KERNEL_OK")
</pallas_src>

<mosaic_0001>
module attributes {stable_mosaic.version = 11 : i64} {
  func.func @_proj_kernel(%arg0: i32, %arg1: memref<128x256xf32, #tpu.memory_space<vmem>>, %arg2: memref<256x128xf32, #tpu.memory_space<vmem>>, %arg3: memref<128x128xf32, #tpu.memory_space<vmem>>) attributes {dimension_semantics = [#tpu.dimension_semantics<parallel>], iteration_bounds = array<i64: 4>, scalar_prefetch = 0 : i64, scratch_operands = 0 : i64, tpu.core_type = #tpu.core_type<tc>, window_params = [{transform_indices = @transform_0, window_bounds = array<i64: 128, 256>}, {pipeline_mode = #tpu.pipeline_mode<synchronous>, transform_indices = @transform_1, window_bounds = array<i64: 256, 128>}, {transform_indices = @transform_2, window_bounds = array<i64: 128, 128>}]} {
    %c0 = arith.constant 0 : index
    %c0_0 = arith.constant 0 : index
    %0 = vector.load %arg1[%c0, %c0_0] : memref<128x256xf32, #tpu.memory_space<vmem>>, vector<128x256xf32>
    %c0_1 = arith.constant 0 : index
    %c0_2 = arith.constant 0 : index
    %1 = vector.load %arg2[%c0_1, %c0_2] : memref<256x128xf32, #tpu.memory_space<vmem>>, vector<256x128xf32>
    %cst = arith.constant dense<0.000000e+00> : vector<128x128xf32>
    %2 = tpu.matmul %0, %1, %cst {dimension_numbers = #tpu.dot_dimension_numbers<[1], [0], [0], [1], [0, 0, 1, 1], [], []>} : vector<128x256xf32>, vector<256x128xf32>, vector<128x128xf32> -> vector<128x128xf32>
    %c0_3 = arith.constant 0 : index
    %c0_4 = arith.constant 0 : index
    %3 = vector.load %arg3[%c0_3, %c0_4] : memref<128x128xf32, #tpu.memory_space<vmem>>, vector<128x128xf32>
    tpu.vector_store %arg3[%c0_3, %c0_4], %2 {strides = array<i32>} : memref<128x128xf32, #tpu.memory_space<vmem>>, vector<128x128xf32>,
    return
  }
  func.func @transform_0(%arg0: i32) -> (i32, i32) {
    %c0_i32 = arith.constant 0 : i32
    %c0_i32_0 = arith.constant 0 : i32
    return %arg0, %c0_i32 : i32, i32
  }
  func.func @transform_1(%arg0: i32) -> (i32, i32) {
    %c0_i32 = arith.constant 0 : i32
    %c0_i32_0 = arith.constant 0 : i32
    %c0_i32_1 = arith.constant 0 : i32
    return %c0_i32, %c0_i32_0 : i32, i32
  }
  func.func @transform_2(%arg0: i32) -> (i32, i32) {
    %c0_i32 = arith.constant 0 : i32
    %c0_i32_0 = arith.constant 0 : i32
    return %arg0, %c0_i32 : i32, i32
  }
}

</mosaic_0001>

<bundles_post_ra>
// kernel: tpu_custom_call.1
= control target key start
LH: loop header
LB: loop body
LE: loop exit
PB: predicated region body
PF: predicated region fallthrough
CT: control target
= control target key end

     0   :  { %7 = vsyncpa [#allocation3], 0  ;;  %s954_s0 = inlined_call_operand.hbm [shape: f32[512,256], index: 0, kind: input, shape index: {}]   ;;  %s955_s1 = inlined_call_operand.hbm [shape: f32[256,128], index: 1, kind: input, shape index: {}]   ;;  %s956_s2 = inlined_call_operand.hbm [shape: f32[512,128], index: 2, kind: output, shape index: {}]  }
   0x1   :  { %9 = vsyncpa [#allocation3 + $0x1], 0 }
   0x2   :  { %10 = vsyncpa [#allocation6], 0 }
   0x3   :  { %11 = vsyncpa [#allocation4], 0 }
   0x4   :  { %13 = vsyncpa [#allocation4 + $0x1], 0  ;;  %s762_s9 = smov 0   ;;  %s764_s10 = smov 0  }
   0x5   :  { %s766_s11 = smov 0   ;;  %s768_s12 = smov 0  }
   0x6 LB: > { %s783_s13 = sadd.s32 4294967295, %s738_s12   ;;  %s493_s14 = sadd.s32 4294967294, %s738_s12   ;;  %s738_s12 = sphi %s768_s12, %s965_s12   ;;  %s734_s11 = sphi %s766_s11, %s964_s11   ;;  %s730_s10 = sphi %s764_s10, %s963_s10   ;;  %s726_s9 = sphi %s762_s9, %s962_s9  }
   0x7   : > { %p39_p0 = scmp.ne.s32.totalorder %s730_s10, %s726_s9  ;;  %p40_p1 = scmp.eq.s32.totalorder %s783_s13, 0 }
   0x8   : > { %p84_p2 = scmp.eq.s32.totalorder %s783_s13, 3  ;;  %p90_p3 = scmp.eq.s32.totalorder %s493_s14, 3 }
   0x9   : > { %p792_p4 = por %p40_p1, %p39_p0  ;;  %p494_p5 = scmp.ge.s32.totalorder %s738_s12, 1 }
   0xa   : > { %p797_p6 = por %p90_p3, %p39_p0  ;;  %p97_p7 = scmp.lt.s32.totalorder %s738_s12, 5 }
   0xb   : > { %s108_s19 = sshll.u32 %s955_s1, 4  ;;  %s740_s21 = smov [#allocation5]   ;;  %s109_s19 = int_to_ptr.hbm [resolvable:$true] %s108_s19 }
   0xc   : > { %p805_p8 = pnand %p494_p5, %p97_p7  ;;  %s110_s22 = sshll.u32 %s740_s21, 4  ;;  %s111_s22 = int_to_ptr.vmem [resolvable:$true] %s110_s22 }
   0xd   : > { %s814_s23 = sadd.s32 1, %s738_s12   ;;  %s741_s24 = smov 128  }
   0xe   : > { %p553_p9 = pneg %p805_p8  ;;  %s742_s25 = smov 8  }
   0xf   : > { %s23_s26 = ssub.s32 %s738_s12, %s814_s23  ;;  %s26_s27 = sadd.s32 1, %s734_s11 }
  0x10   : > { %p554_p10 = pnand %p553_p9, %p40_p1  ;;  %p24_p11 = scmp.eq.s32.totalorder %s23_s26, 0 }
  0x11   : > { %p33_p12 = scmp.ne.s32.totalorder %s734_s11, %s730_s10  ;;  %p34_p13 = scmp.eq.s32.totalorder %s738_s12, 0 }
  0x12   : > { %556 = dma.hbm_to_vmem [thread:$0]  (!%p554_p10), %s109_s19, 4096, %s111_s22, [#allocation6], %s741_s24, %s741_s24, %s742_s25  }
  0x13   : > { %p566_p0 = scmp.lt.s32.totalorder %s738_s12, 4  ;;  %p35_p3 = por %p34_p13, %p33_p12 }
  0x14   : > { %s824_s28 = scalar_select %p24_p11, %s734_s11, %s26_s27  }
  0x15   : > { %p828_p5 = por %p84_p2, %p33_p12  ;;  %s124_s30 = sand.u32 1, %s734_s11  }
  0x16   : > { %s511_s3 = sshll.u32 %s738_s12, 8  ;;  %s497_s4 = sshll.u32 %s124_s30, 8 }
  0x17   : > { %s134_s7 = scalar_lea.hbm %s954_s0, %s511_s3  ;;  %s128_s14 = scalar_lea.vmem [#allocation2], %s497_s4 }
  0x18   : > { %s135_s8 = sshll.u32 %s134_s7, 4  ;;  %s137_s17 = sshll.u32 %s128_s14, 4  ;;  %s136_s8 = int_to_ptr.hbm [resolvable:$true] %s135_s8  ;;  %s138_s17 = int_to_ptr.vmem [resolvable:$true] %s137_s17 }
  0x19   : > { %p839_p7 = pnand %p566_p0, %p35_p3  ;;  %s125_s19 = scalar_lea.sflag [#allocation3], %s124_s30 }
  0x1a   : > { %s638_s21 = sshra.s32 %s136_s8, 4  ;;  %s645_s26 = scalar_lea.hbm %s954_s0, 1024  ;;  %s639_s21 = int_to_ptr.hbm [resolvable:$true] %s638_s21 }
  0x1b   : > { %s640_s22 = scalar_lea.hbm %s639_s21, 256  ;;  %p642_p9 = pneg %p839_p7 }
  0x1c   : > { %p641_p2 = scmp.ne.s32.totalorder %s639_s21, %s640_s22  ;;  %p646_p12 = scmp.lt.s32.totalorder %s639_s21, %s954_s0 }
  0x1d   : > { %p647_p13 = scmp.lt.s32.totalorder %s645_s26, %s640_s22 }
  0x1e   : > { %p643_p10 = pnand %p642_p9, %p641_p2 }
  0x1f   : > { %p648_p0 = por %p647_p13, %p646_p12 }
  0x20   : > { %p644_p11 = pneg %p643_p10 }
  0x22   : > { %p649_p3 = pnand %p648_p0, %p644_p11 }
  0x24   : > { %652 = shalt.err (!%p649_p3)
}
  0x25   : > { %s743_s30 = smov 256   ;;  %s744_s4 = smov 16  }
  0x26   : > { %560 = dma.hbm_to_vmem [thread:$0]  (!%p839_p7), %s136_s8, 4096, %s138_s17, %s125_s19, %s743_s30, %s743_s30, %s744_s4  }
  0x27   : > { %149 = sbr.rel (%p805_p8) target bundleno = 274 (0x112), region = 28  ;;  %s856_s5 = sand.u32 (!%p805_p8), 1, %s730_s10  }
  0x28   : > { %s502_s6 = sshll.u32 (!%p805_p8), %s856_s5, 8  ;;  %s152_s7 = scalar_lea.sflag (!%p805_p8), [#allocation3], %s856_s5 }
  0x29   : > { %s860_s14 = scalar_lea.vmem (!%p805_p8), [#allocation2], %s502_s6 }
  0x2c   : > { %713 = dma.done.wait (%p792_p4), %s152_s7, 4096  }
  0x2d   : > { %715 = vsyncadd (%p792_p4), %s152_s7, 4294963200 }
  0x2e   : > { %717 = dma.done.wait (%p40_p1), [#allocation6], 4096  }
  0x2f   : > { %719 = vsyncadd (%p40_p1), [#allocation6], 4294963200  ;;  %v231_v0 = vld [vmem:[#allocation5 + $0x78] sm:$0xff]  ;;  %v230_v2 = vld [vmem:[#allocation5 + $0x70] sm:$0xff]  ;;  %s504_s15 = sshll.u32 %s856_s5, 7  ;;  %s512_s8 = sshll.u32 %s783_s13, 7 }
  0x30   : > { %v247_v1 = vld [vmem:[#allocation5 + $0xf8] sm:$0xff]  ;;  %513 = vmatpush.msra.mxu2 %v231_v0  ;;  %v246_v3 = vld [vmem:[#allocation5 + $0xf0] sm:$0xff]  ;;  %v229_v4 = vld [vmem:[#allocation5 + $0x68] sm:$0xff]  ;;  %248 = vmatpush.msra.mxu0 %v231_v0  ;;  %s903_s20 = scalar_lea.vmem [#allocation7], %s504_s15  ;;  %s406_s19 = scalar_lea.hbm %s956_s2, %s512_s8 }
  0x31   : > { %529 = vmatpush.msra.mxu3 %v247_v1  ;;  %v245_v5 = vld [vmem:[#allocation5 + $0xe8] sm:$0xff]  ;;  %313 = vmatpush.msra.mxu1 %v247_v1  ;;  %v228_v6 = vld [vmem:[#allocation5 + $0x60] sm:$0xff]  ;;  %v227_v8 = vld [vmem:[#allocation5 + $0x58] sm:$0xff]  ;;  %s407_s21 = sshll.u32 %s903_s20, 4  ;;  %s409_s22 = sshll.u32 %s406_s19, 4  ;;  %s408_s21 = int_to_ptr.vmem [resolvable:$true] %s407_s21  ;;  %s410_s22 = int_to_ptr.hbm [resolvable:$true] %s409_s22 }
  0x32   : > { %514 = vmatpush.msra.mxu2 %v230_v2  ;;  %v244_v7 = vld [vmem:[#allocation5 + $0xe0] sm:$0xff]  ;;  %249 = vmatpush.msra.mxu0 %v230_v2  ;;  %v243_v9 = vld [vmem:[#allocation5 + $0xd8] sm:$0xff]  ;;  %v226_v10 = vld [vmem:[#allocation5 + $0x50] sm:$0xff]  ;;  %s395_s13 = scalar_lea.sflag [#allocation4], %s856_s5  ;;  %s682_s24 = sshra.s32 %s410_s22, 4  ;;  %s683_s24 = int_to_ptr.hbm [resolvable:$true] %s682_s24 }
  0x33   : > { %530 = vmatpush.msra.mxu3 %v246_v3  ;;  %314 = vmatpush.msra.mxu1 %v246_v3  ;;  %v242_v11 = vld [vmem:[#allocation5 + $0xd0] sm:$0xff]  ;;  %v225_v12 = vld [vmem:[#allocation5 + $0x48] sm:$0xff]  ;;  %v224_v14 = vld [vmem:[#allocation5 + $0x40] sm:$0xff]  ;;  %s684_s25 = scalar_lea.hbm %s683_s24, 128  ;;  %s688_s3 = scalar_lea.hbm %s956_s2, 512 }
  0x34   : > { %515 = vmatpush.msra.mxu2 %v229_v4  ;;  %250 = vmatpush.msra.mxu0 %v229_v4  ;;  %v241_v13 = vld [vmem:[#allocation5 + $0xc8] sm:$0xff]  ;;  %v240_v15 = vld [vmem:[#allocation5 + $0xc0] sm:$0xff]  ;;  %v223_v16 = vld [vmem:[#allocation5 + $0x38] sm:$0xff]  ;;  %p685_p1 = scmp.ne.s32.totalorder %s683_s24, %s684_s25  ;;  %p689_p7 = scmp.lt.s32.totalorder %s683_s24, %s956_s2 }
  0x35   : > { %531 = vmatpush.msra.mxu3 %v245_v5  ;;  %315 = vmatpush.msra.mxu1 %v245_v5  ;;  %v239_v17 = vld [vmem:[#allocation5 + $0xb8] sm:$0xff]  ;;  %v222_v18 = vld [vmem:[#allocation5 + $0x30] sm:$0xff]  ;;  %v221_v20 = vld [vmem:[#allocation5 + $0x28] sm:$0xff]  ;;  %p690_p2 = scmp.lt.s32.totalorder %s688_s3, %s684_s25 }
  0x36   : > { %516 = vmatpush.msra.mxu2 %v228_v6  ;;  %251 = vmatpush.msra.mxu0 %v228_v6  ;;  %v238_v19 = vld [vmem:[#allocation5 + $0xb0] sm:$0xff]  ;;  %v237_v21 = vld [vmem:[#allocation5 + $0xa8] sm:$0xff]  ;;  %v220_v22 = vld [vmem:[#allocation5 + $0x20] sm:$0xff]  ;;  %p686_p4 = pnand %p685_p1, %p828_p5 }
  0x37   : > { %532 = vmatpush.msra.mxu3 %v244_v7  ;;  %316 = vmatpush.msra.mxu1 %v244_v7  ;;  %v236_v23 = vld [vmem:[#allocation5 + $0xa0] sm:$0xff]  ;;  %v219_v24 = vld [vmem:[#allocation5 + $0x18] sm:$0xff]  ;;  %v218_v26 = vld [vmem:[#allocation5 + $0x10] sm:$0xff]  ;;  %p691_p9 = por %p690_p2, %p689_p7 }
  0x38   : > { %517 = vmatpush.msra.mxu2 %v227_v8  ;;  %252 = vmatpush.msra.mxu0 %v227_v8  ;;  %v235_v25 = vld [vmem:[#allocation5 + $0x98] sm:$0xff]  ;;  %v234_v27 = vld [vmem:[#allocation5 + $0x90] sm:$0xff]  ;;  %v217_v28 = vld [vmem:[#allocation5 + $0x8] sm:$0xff]  ;;  %p687_p8 = pneg %p686_p4 }
  0x39   : > { %533 = vmatpush.msra.mxu3 %v243_v9  ;;  %317 = vmatpush.msra.mxu1 %v243_v9  ;;  %v233_v29 = vld [vmem:[#allocation5 + $0x88] sm:$0xff]  ;;  %v216_v30 = vld [vmem:[#allocation5] sm:$0xff]  ;;  %v202_v36 = vld [vmem:[%s860_s14 + $0x90] sm:$0xff] }
  0x3a   : > { %518 = vmatpush.msra.mxu2 %v226_v10  ;;  %253 = vmatpush.msra.mxu0 %v226_v10  ;;  %v232_v31 = vld [vmem:[#allocation5 + $0x80] sm:$0xff]  ;;  %v201_v33 = vld [vmem:[%s860_s14 + $0x88] sm:$0xff]  ;;  %v203_v37 = vld [vmem:[%s860_s14 + $0x98] sm:$0xff]  ;;  %p692_p10 = pnand %p691_p9, %p687_p8 }
  0x3b   : > { %534 = vmatpush.msra.mxu3 %v242_v11  ;;  %318 = vmatpush.msra.mxu1 %v242_v11  ;;  %v200_v32 = vld [vmem:[%s860_s14 + $0x80] sm:$0xff]  ;;  %v185_v35 = vld [vmem:[%s860_s14 + $0x8] sm:$0xff]  ;;  %v186_v38 = vld [vmem:[%s860_s14 + $0x10] sm:$0xff] }
  0x3c   : > { %519 = vmatpush.msra.mxu2 %v225_v12  ;;  %254 = vmatpush.msra.mxu0 %v225_v12  ;;  %v184_v34 = vld [vmem:[%s860_s14] sm:$0xff]  ;;  %v187_v39 = vld [vmem:[%s860_s14 + $0x18] sm:$0xff]  ;;  %v205_v41 = vld [vmem:[%s860_s14 + $0xa8] sm:$0xff] }
  0x3d   : > { %535 = vmatpush.msra.mxu3 %v241_v13  ;;  %319 = vmatpush.msra.mxu1 %v241_v13  ;;  %v204_v40 = vld [vmem:[%s860_s14 + $0xa0] sm:$0xff]  ;;  %v189_v43 = vld [vmem:[%s860_s14 + $0x28] sm:$0xff]  ;;  %v206_v44 = vld [vmem:[%s860_s14 + $0xb0] sm:$0xff] }
  0x3e   : > { %520 = vmatpush.msra.mxu2 %v224_v14  ;;  %255 = vmatpush.msra.mxu0 %v224_v14  ;;  %v188_v42 = vld [vmem:[%s860_s14 + $0x20] sm:$0xff]  ;;  %v207_v45 = vld [vmem:[%s860_s14 + $0xb8] sm:$0xff]  ;;  %v190_v46 = vld [vmem:[%s860_s14 + $0x30] sm:$0xff] }
  0x3f   : > { %536 = vmatpush.msra.mxu3 %v240_v15  ;;  %320 = vmatpush.msra.mxu1 %v240_v15  ;;  %v191_v47 = vld [vmem:[%s860_s14 + $0x38] sm:$0xff]  ;;  %v208_v48 = vld [vmem:[%s860_s14 + $0xc0] sm:$0xff]  ;;  %v209_v49 = vld [vmem:[%s860_s14 + $0xc8] sm:$0xff] }
  0x40   : > { %521 = vmatpush.msra.mxu2 %v223_v16  ;;  %256 = vmatpush.msra.mxu0 %v223_v16  ;;  %v192_v50 = vld [vmem:[%s860_s14 + $0x40] sm:$0xff]  ;;  %v193_v51 = vld [vmem:[%s860_s14 + $0x48] sm:$0xff]  ;;  %v210_v52 = vld [vmem:[%s860_s14 + $0xd0] sm:$0xff] }
  0x41   : > { %537 = vmatpush.msra.mxu3 %v239_v17  ;;  %321 = vmatpush.msra.mxu1 %v239_v17  ;;  %v211_v53 = vld [vmem:[%s860_s14 + $0xd8] sm:$0xff]  ;;  %v194_v54 = vld [vmem:[%s860_s14 + $0x50] sm:$0xff]  ;;  %v212_v56 = vld [vmem:[%s860_s14 + $0xe0] sm:$0xff] }
  0x42   : > { %522 = vmatpush.msra.mxu2 %v222_v18  ;;  %257 = vmatpush.msra.mxu0 %v222_v18  ;;  %v195_v55 = vld [vmem:[%s860_s14 + $0x58] sm:$0xff]  ;;  %v213_v57 = vld [vmem:[%s860_s14 + $0xe8] sm:$0xff]  ;;  %v196_v58 = vld [vmem:[%s860_s14 + $0x60] sm:$0xff] }
  0x43   : > { %538 = vmatpush.msra.mxu3 %v238_v19  ;;  %322 = vmatpush.msra.mxu1 %v238_v19  ;;  %v197_v59 = vld [vmem:[%s860_s14 + $0x68] sm:$0xff]  ;;  %v214_v60 = vld [vmem:[%s860_s14 + $0xf0] sm:$0xff]  ;;  %v215_v61 = vld [vmem:[%s860_s14 + $0xf8] sm:$0xff] }
  0x44   : > { %523 = vmatpush.msra.mxu2 %v221_v20  ;;  %258 = vmatpush.msra.mxu0 %v221_v20  ;;  %v198_v62 = vld [vmem:[%s860_s14 + $0x70] sm:$0xff]  ;;  %v199_v63 = vld [vmem:[%s860_s14 + $0x78] sm:$0xff] }
  0x45   : > { %539 = vmatpush.msra.mxu3 %v237_v21  ;;  %323 = vmatpush.msra.mxu1 %v237_v21 }
  0x46   : > { %524 = vmatpush.msra.mxu2 %v220_v22  ;;  %259 = vmatpush.msra.mxu0 %v220_v22 }
  0x47   : > { %540 = vmatpush.msra.mxu3 %v236_v23  ;;  %324 = vmatpush.msra.mxu1 %v236_v23 }
  0x48   : > { %525 = vmatpush.msra.mxu2 %v219_v24  ;;  %260 = vmatpush.msra.mxu0 %v219_v24 }
  0x49   : > { %541 = vmatpush.msra.mxu3 %v235_v25  ;;  %325 = vmatpush.msra.mxu1 %v235_v25 }
  0x4a   : > { %526 = vmatpush.msra.mxu2 %v218_v26  ;;  %261 = vmatpush.msra.mxu0 %v218_v26 }
  0x4b   : > { %542 = vmatpush.msra.mxu3 %v234_v27  ;;  %326 = vmatpush.msra.mxu1 %v234_v27 }
  0x4c   : > { %527 = vmatpush.msra.mxu2 %v217_v28  ;;  %262 = vmatpush.msra.mxu0 %v217_v28 }
  0x4d   : > { %543 = vmatpush.msra.mxu3 %v233_v29  ;;  %327 = vmatpush.msra.mxu1 %v233_v29 }
  0x4e   : > { %528 = vmatpush.msra.mxu2 %v216_v30  ;;  %263 = vmatpush.msra.mxu0 %v216_v30 }
  0x4f   : > { %544 = vmatpush.msra.mxu3 %v232_v31  ;;  %288 = vmatmul.f32.vlgmr.msra.gmra.mxu2 %v200_v32 }
  0x50   : > { %353 = vmatmul.f32.vlgmr.msra.gmra.mxu3 %v201_v33  ;;  %328 = vmatpush.msra.mxu1 %v232_v31 }
  0x51   : > { %264 = vmatmul.f32.vlgmr.msra.gmra.mxu0 %v184_v34  ;;  %329 = vmatmul.f32.vlgmr.msra.gmra.mxu1 %v185_v35 }
  0x57   : > { %291 = vmatmul.f32.gmra.mxu2 %v202_v36 }
  0x58   : > { %356 = vmatmul.f32.gmra.mxu3 %v203_v37 }
  0x59   : > { %267 = vmatmul.f32.gmra.mxu0 %v186_v38  ;;  %332 = vmatmul.f32.gmra.mxu1 %v187_v39 }
  0x5f   : > { %294 = vmatmul.f32.gmra.mxu2 %v204_v40 }
  0x60   : > { %359 = vmatmul.f32.gmra.mxu3 %v205_v41 }
  0x61   : > { %270 = vmatmul.f32.gmra.mxu0 %v188_v42  ;;  %335 = vmatmul.f32.gmra.mxu1 %v189_v43 }
  0x67   : > { %297 = vmatmul.f32.gmra.mxu2 %v206_v44 }
  0x68   : > { %362 = vmatmul.f32.gmra.mxu3 %v207_v45 }
  0x69   : > { %273 = vmatmul.f32.gmra.mxu0 %v190_v46  ;;  %338 = vmatmul.f32.gmra.mxu1 %v191_v47 }
  0x6f   : > { %300 = vmatmul.f32.gmra.mxu2 %v208_v48 }
  0x70   : > { %365 = vmatmul.f32.gmra.mxu3 %v209_v49 }
  0x71   : > { %276 = vmatmul.f32.gmra.mxu0 %v192_v50  ;;  %341 = vmatmul.f32.gmra.mxu1 %v193_v51 }
  0x77   : > { %303 = vmatmul.f32.gmra.mxu2 %v210_v52 }
  0x78   : > { %368 = vmatmul.f32.gmra.mxu3 %v211_v53 }
  0x79   : > { %279 = vmatmul.f32.gmra.mxu0 %v194_v54  ;;  %344 = vmatmul.f32.gmra.mxu1 %v195_v55 }
  0x7f   : > { %306 = vmatmul.f32.gmra.mxu2 %v212_v56 }
  0x80   : > { %371 = vmatmul.f32.gmra.mxu3 %v213_v57 }
  0x81   : > { %282 = vmatmul.f32.gmra.mxu0 %v196_v58  ;;  %347 = vmatmul.f32.gmra.mxu1 %v197_v59 }
  0x87   : > { %309 = vmatmul.f32.gmra.mxu2 %v214_v60 }
  0x88   : > { %374 = vmatmul.f32.gmra.mxu3 %v215_v61 }
  0x89   : > { %285 = vmatmul.f32.gmra.mxu0 %v198_v62  ;;  %350 = vmatmul.f32.gmra.mxu1 %v199_v63 }
  0xce   : > { %v265_v0 = vpop.f32.mrf.mxu0  ;;  %v330_v1 = vpop.f32.mrf.mxu1 }
  0xcf   : > { %v331_v2 = vadd.f32 %v330_v1, %v265_v0 }
  0xd1   : > { %378 = vst [vmem:[%s903_s20] sm:$0xff] %v331_v2 }
  0xd2   : > { %v289_v3 = vpop.f32.mrf.mxu2 }
  0xd3   : > { %v354_v4 = vpop.f32.mrf.mxu3 }
  0xd4   : > { %v355_v5 = vadd.f32 %v354_v4, %v289_v3 }
  0xd6   : > { %386 = vst [vmem:[%s903_s20 + $0x40] sm:$0xff] %v355_v5  ;;  %v268_v6 = vpop.f32.mrf.mxu0  ;;  %v333_v7 = vpop.f32.mrf.mxu1 }
  0xd7   : > { %v334_v8 = vadd.f32 %v333_v7, %v268_v6 }
  0xd9   : > { %379 = vst [vmem:[%s903_s20 + $0x8] sm:$0xff] %v334_v8 }
  0xda   : > { %v292_v9 = vpop.f32.mrf.mxu2 }
  0xdb   : > { %v357_v10 = vpop.f32.mrf.mxu3 }
  0xdc   : > { %v358_v11 = vadd.f32 %v357_v10, %v292_v9 }
  0xde   : > { %387 = vst [vmem:[%s903_s20 + $0x48] sm:$0xff] %v358_v11  ;;  %v271_v12 = vpop.f32.mrf.mxu0  ;;  %v336_v13 = vpop.f32.mrf.mxu1 }
  0xdf   : > { %v337_v14 = vadd.f32 %v336_v13, %v271_v12 }
  0xe1   : > { %380 = vst [vmem:[%s903_s20 + $0x10] sm:$0xff] %v337_v14 }
  0xe2   : > { %v295_v15 = vpop.f32.mrf.mxu2 }
  0xe3   : > { %v360_v16 = vpop.f32.mrf.mxu3 }
  0xe4   : > { %v361_v17 = vadd.f32 %v360_v16, %v295_v15 }
  0xe6   : > { %388 = vst [vmem:[%s903_s20 + $0x50] sm:$0xff] %v361_v17  ;;  %v274_v18 = vpop.f32.mrf.mxu0  ;;  %v339_v19 = vpop.f32.mrf.mxu1 }
  0xe7   : > { %v340_v20 = vadd.f32 %v339_v19, %v274_v18 }
  0xe9   : > { %381 = vst [vmem:[%s903_s20 + $0x18] sm:$0xff] %v340_v20 }
  0xea   : > { %v298_v21 = vpop.f32.mrf.mxu2 }
  0xeb   : > { %v363_v22 = vpop.f32.mrf.mxu3 }
  0xec   : > { %v364_v23 = vadd.f32 %v363_v22, %v298_v21 }
  0xee   : > { %389 = vst [vmem:[%s903_s20 + $0x58] sm:$0xff] %v364_v23  ;;  %v277_v24 = vpop.f32.mrf.mxu0  ;;  %v342_v25 = vpop.f32.mrf.mxu1 }
  0xef   : > { %v343_v26 = vadd.f32 %v342_v25, %v277_v24 }
  0xf1   : > { %382 = vst [vmem:[%s903_s20 + $0x20] sm:$0xff] %v343_v26 }
  0xf2   : > { %v301_v27 = vpop.f32.mrf.mxu2 }
  0xf3   : > { %v366_v28 = vpop.f32.mrf.mxu3 }
  0xf4   : > { %v367_v29 = vadd.f32 %v366_v28, %v301_v27 }
  0xf6   : > { %390 = vst [vmem:[%s903_s20 + $0x60] sm:$0xff] %v367_v29  ;;  %v280_v30 = vpop.f32.mrf.mxu0  ;;  %v345_v31 = vpop.f32.mrf.mxu1 }
  0xf7   : > { %v346_v32 = vadd.f32 %v345_v31, %v280_v30 }
  0xf9   : > { %383 = vst [vmem:[%s903_s20 + $0x28] sm:$0xff] %v346_v32 }
  0xfa   : > { %v304_v33 = vpop.f32.mrf.mxu2 }
  0xfb   : > { %v369_v34 = vpop.f32.mrf.mxu3 }
  0xfc   : > { %v370_v35 = vadd.f32 %v369_v34, %v304_v33 }
  0xfe   : > { %391 = vst [vmem:[%s903_s20 + $0x68] sm:$0xff] %v370_v35  ;;  %v283_v36 = vpop.f32.mrf.mxu0  ;;  %v348_v37 = vpop.f32.mrf.mxu1 }
  0xff   : > { %v349_v38 = vadd.f32 %v348_v37, %v283_v36 }
 0x101   : > { %384 = vst [vmem:[%s903_s20 + $0x30] sm:$0xff] %v349_v38 }
 0x102   : > { %v307_v39 = vpop.f32.mrf.mxu2 }
 0x103   : > { %v372_v40 = vpop.f32.mrf.mxu3 }
 0x104   : > { %v373_v41 = vadd.f32 %v372_v40, %v307_v39 }
 0x106   : > { %392 = vst [vmem:[%s903_s20 + $0x70] sm:$0xff] %v373_v41  ;;  %v286_v42 = vpop.f32.mrf.mxu0  ;;  %v351_v43 = vpop.f32.mrf.mxu1 }
 0x107   : > { %v352_v44 = vadd.f32 %v351_v43, %v286_v42 }
 0x109   : > { %385 = vst [vmem:[%s903_s20 + $0x38] sm:$0xff] %v352_v44 }
 0x10a   : > { %v310_v45 = vpop.f32.mrf.mxu2 }
 0x10b   : > { %v375_v46 = vpop.f32.mrf.mxu3 }
 0x10c   : > { %v376_v47 = vadd.f32 %v375_v46, %v310_v45 }
 0x10e   : > { %393 = vst [vmem:[%s903_s20 + $0x78] sm:$0xff] %v376_v47 }
 0x10f   : > { %695 = shalt.err (!%p692_p10)
}
 0x110   : > { %s745_s5 = smov 128   ;;  %s746_s6 = smov 8  }
 0x111   : > { %551 = dma.vmem_to_hbm [thread:$0]  (%p828_p5), %s408_s21, 2048, %s410_s22, %s395_s13, %s745_s5, %s745_s5, %s746_s6  }
 0x112 PF: > { %p568_p11 = scmp.ge.s32.totalorder %s738_s12, 2  ;;  %s424_s7 = sand.u32 1, %s726_s9  }
 0x113   : > { %s425_s14 = scalar_lea.sflag [#allocation4], %s424_s7 }
 0x114   : > { %p562_p12 = pnand %p568_p11, %p797_p6 }
 0x116   : > { %p563_p13 = pneg %p562_p12 }
 0x118   : > { %721 = dma.done.wait (%p563_p13), %s425_s14, 2048  }
 0x119   : > { %723 = vsyncadd (%p563_p13), %s425_s14, 4294965248  ;;  %p16_p0 = scmp.ge.s32.totalorder %s814_s23, 6   ;;  %s962_s9 = smov %s730_s10 }
 0x11a   : > { %s963_s10 = smov %s734_s11  ;;  %s964_s11 = smov %s824_s28 }
 0x11b   : > { %s965_s12 = smov %s814_s23  ;;  %18 = sbr.rel (!%p16_p0) target bundleno = 6 (0x6), region = 77 }
 0x120   :  { %431 = vsyncpa [#allocation3], 1 }
 0x121   :  { %433 = vsyncpa [#allocation3 + $0x1], 1 }
 0x122   :  { %434 = vsyncpa [#allocation6], 1 }
 0x123   :  { %435 = vsyncpa [#allocation4], 1 }
 0x124   :  { %437 = vsyncpa [#allocation4 + $0x1], 1 }

</bundles_post_ra>
